<compile_context>
chip_gen: v7x
topology: tpu7x:2x2x1
jax: 0.10.0
libtpu: 0.0.40
codegen_flags: <defaults>
</compile_context>

<pallas_src>
import functools
import math

import jax
import jax.numpy as jnp
from jax.experimental import pallas as pl
from jax.experimental.pallas import tpu as pltpu


def _attention_kernel(xq_ref, xkv_ref, wq_ref, wkv_ref, wo_ref, o_ref, *,
                      heads, dim_head):
    """Grid = (B, num_query_tiles); both axes fully parallel (no reduction)."""
    hidden = heads * dim_head
    scale = dim_head ** -0.5

    # bf16 operands for every MXU matmul, f32 accumulation, f32 softmax math.
    xq = xq_ref[0].astype(jnp.bfloat16)       # (tq, D)  query rows of this tile
    xkv = xkv_ref[0].astype(jnp.bfloat16)     # (N,  D)  full context rows
    wq = wq_ref[...].astype(jnp.bfloat16)     # (D, hidden)
    wkv = wkv_ref[...].astype(jnp.bfloat16)   # (D, 2*hidden)
    wo = wo_ref[...].astype(jnp.bfloat16)     # (hidden, D)

    # Fused projections across all heads (lane-dense outputs).
    q = jnp.dot(xq, wq, preferred_element_type=jnp.float32)      # (tq, hidden)
    kv = jnp.dot(xkv, wkv, preferred_element_type=jnp.float32)   # (N, 2*hidden)
    k = kv[:, :hidden]
    v = kv[:, hidden:]

    # Per-head attention (static unrolled loop; heads is small, e.g. 4).
    out_heads = []
    for h in range(heads):
        sl = slice(h * dim_head, (h + 1) * dim_head)
        qh = q[:, sl].astype(jnp.bfloat16)        # (tq, dh)
        kh = k[:, sl].astype(jnp.bfloat16)        # (N,  dh)
        vh = v[:, sl].astype(jnp.bfloat16)        # (N,  dh)

        # sim[i, j] = sum_d qh[i, d] * kh[j, d]  -- contract last dims, no transpose
        sim = jax.lax.dot_general(
            qh, kh, dimension_numbers=(((1,), (1,)), ((), ())),
            preferred_element_type=jnp.float32) * scale            # (tq, N)

        # softmax over keys (f32); denominator via EUP approx reciprocal.
        sim = sim - jnp.max(sim, axis=-1, keepdims=True)
        p = jnp.exp(sim)
        p = p * pl.reciprocal(jnp.sum(p, axis=-1, keepdims=True), approx=True)

        oh = jnp.dot(p.astype(jnp.bfloat16), vh,
                     preferred_element_type=jnp.float32)           # (tq, dh)
        out_heads.append(oh)

    out_hidden = jnp.concatenate(out_heads, axis=-1)               # (tq, hidden)

    # Single fused output projection (contraction dim = hidden, e.g. 128).
    o = jnp.dot(out_hidden.astype(jnp.bfloat16), wo,
                preferred_element_type=jnp.float32)                # (tq, D)
    o_ref[0] = o.astype(o_ref.dtype)


def attention_forward(x, w_q, w_kv, w_out, *, heads, dim_head, q_tile=None):
    """x: (B, N, D) f32.  w_q: (D, hidden), w_kv: (D, 2*hidden), w_out: (hidden, D).
    Returns (B, N, D) f32 — the `Attention.forward(x)` of the PyTorch module."""
    B, N, D = x.shape
    hidden = heads * dim_head
    assert w_q.shape == (D, hidden)
    assert w_kv.shape == (D, 2 * hidden)
    assert w_out.shape == (hidden, D)

    if q_tile is None:
        q_tile = 128 if (N % 128 == 0) else N
    assert N % q_tile == 0 and (q_tile % 8 == 0 or q_tile == N)

    grid = (B, N // q_tile)
    kernel = functools.partial(_attention_kernel, heads=heads, dim_head=dim_head)

    return pl.pallas_call(
        kernel,
        out_shape=jax.ShapeDtypeStruct((B, N, D), x.dtype),
        grid_spec=pltpu.PrefetchScalarGridSpec(
            num_scalar_prefetch=0,
            grid=grid,
            in_specs=[
                # query rows: tiled over (batch, query-tile)
                pl.BlockSpec((1, q_tile, D), lambda b, t: (b, t, 0)),
                # context rows (for k/v): full N, constant over t -> no re-DMA per tile
                pl.BlockSpec((1, N, D), lambda b, t: (b, 0, 0)),
                # weights: constant block index -> stay resident in VMEM
                pl.BlockSpec((D, hidden), lambda b, t: (0, 0)),
                pl.BlockSpec((D, 2 * hidden), lambda b, t: (0, 0)),
                pl.BlockSpec((hidden, D), lambda b, t: (0, 0)),
            ],
            out_specs=pl.BlockSpec((1, q_tile, D), lambda b, t: (b, t, 0)),
        ),
        compiler_params=pltpu.CompilerParams(
            dimension_semantics=("parallel", "parallel"),
            vmem_limit_bytes=48 * 1024 * 1024,   # stays under v7x's 64 MiB VMEM
        ),
    )(x, x, w_q, w_kv, w_out)


def attention_reference(x, w_q, w_kv, w_out, *, heads, dim_head):
    """Pure-JAX reference mirroring the PyTorch forward (f32 throughout)."""
    B, N, D = x.shape
    hidden = heads * dim_head
    q = x @ w_q                                   # (B, N, hidden)
    kv = x @ w_kv                                 # (B, N, 2*hidden)
    k, v = kv[..., :hidden], kv[..., hidden:]

    def split(t):
        return t.reshape(B, N, heads, dim_head).transpose(0, 2, 1, 3)

    q, k, v = split(q), split(k), split(v)
    scale = dim_head ** -0.5
    sim = jnp.einsum('bhid,bhjd->bhij', q, k) * scale
    attn = jax.nn.softmax(sim, axis=-1)
    out = jnp.einsum('bhij,bhjd->bhid', attn, v)
    out = out.transpose(0, 2, 1, 3).reshape(B, N, hidden)
    return out @ w_out


if __name__ == "__main__":
    # Module defaults: heads=4, dim_head=32 -> hidden_dim=128
    B, N, dim = 2, 16, 8
    heads, dim_head = 4, 32
    hidden = heads * dim_head

    key = jax.random.PRNGKey(0)
    kx, kq, kkv, ko = jax.random.split(key, 4)

    x = jax.random.normal(kx, (B, N, dim), dtype=jnp.float32)

    # Synthetic params in PyTorch nn.Linear layout (out_features, in_features), bias=False.
    to_q_w = jax.random.normal(kq, (hidden, dim), dtype=jnp.float32) / math.sqrt(dim)
    to_kv_w = jax.random.normal(kkv, (2 * hidden, dim), dtype=jnp.float32) / math.sqrt(dim)
    to_out_w = jax.random.normal(ko, (dim, hidden), dtype=jnp.float32) / math.sqrt(hidden)

    # Kernel consumes the transposed (in_features, out_features) layout: y = x @ W.T.
    out = attention_forward(x, to_q_w.T, to_kv_w.T, to_out_w.T,
                            heads=heads, dim_head=dim_head, q_tile=8)
    out = jax.block_until_ready(out)

    ref = attention_reference(x, to_q_w.T, to_kv_w.T, to_out_w.T,
                              heads=heads, dim_head=dim_head)
    assert out.shape == (B, N, dim)
    # bf16 MXU operands + approx reciprocal vs pure-f32 reference -> loose tolerance.
    assert jnp.allclose(out, ref, atol=5e-2, rtol=5e-2), (
        f"mismatch vs reference (max abs err {jnp.max(jnp.abs(out - ref))})")

    print("KERNEL_OK")
</pallas_src>

<mosaic_0001>
module attributes {stable_mosaic.version = 11 : i64} {
  func.func @_attention_kernel(%arg0: i32, %arg1: i32, %arg2: memref<1x8x8xf32, #tpu.memory_space<vmem>>, %arg3: memref<1x16x8xf32, #tpu.memory_space<vmem>>, %arg4: memref<8x128xf32, #tpu.memory_space<vmem>>, %arg5: memref<8x256xf32, #tpu.memory_space<vmem>>, %arg6: memref<128x8xf32, #tpu.memory_space<vmem>>, %arg7: memref<1x8x8xf32, #tpu.memory_space<vmem>>) attributes {dimension_semantics = [#tpu.dimension_semantics<parallel>, #tpu.dimension_semantics<parallel>], iteration_bounds = array<i64: 2, 2>, scalar_prefetch = 0 : i64, scratch_operands = 0 : i64, tpu.core_type = #tpu.core_type<tc>, window_params = [{transform_indices = @transform_0, window_bounds = array<i64: 1, 8, 8>}, {transform_indices = @transform_1, window_bounds = array<i64: 1, 16, 8>}, {pipeline_mode = #tpu.pipeline_mode<synchronous>, transform_indices = @transform_2, window_bounds = array<i64: 8, 128>}, {pipeline_mode = #tpu.pipeline_mode<synchronous>, transform_indices = @transform_3, window_bounds = array<i64: 8, 256>}, {pipeline_mode = #tpu.pipeline_mode<synchronous>, transform_indices = @transform_4, window_bounds = array<i64: 128, 8>}, {transform_indices = @transform_5, window_bounds = array<i64: 1, 8, 8>}]} {
    %c0 = arith.constant 0 : index
    %c0_0 = arith.constant 0 : index
    %c0_1 = arith.constant 0 : index
    %0 = vector.load %arg2[%c0, %c0_0, %c0_1] : memref<1x8x8xf32, #tpu.memory_space<vmem>>, vector<1x8x8xf32>
    %1 = vector.shape_cast %0 : vector<1x8x8xf32> to vector<8x8xf32>
    %2 = arith.truncf %1 : vector<8x8xf32> to vector<8x8xbf16>
    %c0_2 = arith.constant 0 : index
    %c0_3 = arith.constant 0 : index
    %c0_4 = arith.constant 0 : index
    %3 = vector.load %arg3[%c0_2, %c0_3, %c0_4] : memref<1x16x8xf32, #tpu.memory_space<vmem>>, vector<1x16x8xf32>
    %4 = vector.shape_cast %3 : vector<1x16x8xf32> to vector<16x8xf32>
    %5 = arith.truncf %4 : vector<16x8xf32> to vector<16x8xbf16>
    %c0_5 = arith.constant 0 : index
    %c0_6 = arith.constant 0 : index
    %6 = vector.load %arg4[%c0_5, %c0_6] : memref<8x128xf32, #tpu.memory_space<vmem>>, vector<8x128xf32>
    %7 = arith.truncf %6 : vector<8x128xf32> to vector<8x128xbf16>
    %c0_7 = arith.constant 0 : index
    %c0_8 = arith.constant 0 : index
    %8 = vector.load %arg5[%c0_7, %c0_8] : memref<8x256xf32, #tpu.memory_space<vmem>>, vector<8x256xf32>
    %9 = arith.truncf %8 : vector<8x256xf32> to vector<8x256xbf16>
    %c0_9 = arith.constant 0 : index
    %c0_10 = arith.constant 0 : index
    %10 = vector.load %arg6[%c0_9, %c0_10] : memref<128x8xf32, #tpu.memory_space<vmem>>, vector<128x8xf32>
    %11 = arith.truncf %10 : vector<128x8xf32> to vector<128x8xbf16>
    %cst = arith.constant dense<0.000000e+00> : vector<8x128xf32>
    %12 = tpu.matmul %2, %7, %cst {dimension_numbers = #tpu.dot_dimension_numbers<[1], [0], [0], [1], [0, 0, 1, 1], [], []>} : vector<8x8xbf16>, vector<8x128xbf16>, vector<8x128xf32> -> vector<8x128xf32>
    %cst_11 = arith.constant dense<0.000000e+00> : vector<16x256xf32>
    %13 = tpu.matmul %5, %9, %cst_11 {dimension_numbers = #tpu.dot_dimension_numbers<[1], [0], [0], [1], [0, 0, 1, 1], [], []>} : vector<16x8xbf16>, vector<8x256xbf16>, vector<16x256xf32> -> vector<16x256xf32>
    %14 = vector.extract_strided_slice %13 {offsets = [0, 0], sizes = [16, 128], strides = [1, 1]} : vector<16x256xf32> to vector<16x128xf32>
    %15 = vector.extract_strided_slice %13 {offsets = [0, 128], sizes = [16, 128], strides = [1, 1]} : vector<16x256xf32> to vector<16x128xf32>
    %16 = vector.extract_strided_slice %12 {offsets = [0, 0], sizes = [8, 32], strides = [1, 1]} : vector<8x128xf32> to vector<8x32xf32>
    %17 = arith.truncf %16 : vector<8x32xf32> to vector<8x32xbf16>
    %18 = vector.extract_strided_slice %14 {offsets = [0, 0], sizes = [16, 32], strides = [1, 1]} : vector<16x128xf32> to vector<16x32xf32>
    %19 = arith.truncf %18 : vector<16x32xf32> to vector<16x32xbf16>
    %20 = vector.extract_strided_slice %15 {offsets = [0, 0], sizes = [16, 32], strides = [1, 1]} : vector<16x128xf32> to vector<16x32xf32>
    %21 = arith.truncf %20 : vector<16x32xf32> to vector<16x32xbf16>
    %cst_12 = arith.constant dense<0.000000e+00> : vector<8x16xf32>
    %22 = tpu.matmul %17, %19, %cst_12 {dimension_numbers = #tpu.dot_dimension_numbers<[1], [1], [0], [0], [0, 0, 1, 0], [], []>} : vector<8x32xbf16>, vector<16x32xbf16>, vector<8x16xf32> -> vector<8x16xf32>
    %cst_13 = arith.constant 0.176776692 : f32
    %23 = vector.broadcast %cst_13 : f32 to vector<8x16xf32>
    %24 = arith.mulf %22, %23 : vector<8x16xf32>
    %cst_14 = arith.constant dense<0xFF800000> : vector<8xf32>
    %25 = vector.multi_reduction <maximumf>, %24, %cst_14 [1] : vector<8x16xf32> to vector<8xf32>
    %26 = vector.shape_cast %25 : vector<8xf32> to vector<8x1xf32>
    %27 = vector.broadcast %26 : vector<8x1xf32> to vector<8x16xf32>
    %28 = arith.subf %24, %27 : vector<8x16xf32>
    %29 = math.exp %28 : vector<8x16xf32>
    %cst_15 = arith.constant dense<0.000000e+00> : vector<8xf32>
    %30 = vector.multi_reduction <add>, %29, %cst_15 [1] : vector<8x16xf32> to vector<8xf32>
    %31 = vector.shape_cast %30 : vector<8xf32> to vector<8x1xf32>
    %32 = tpu.reciprocal %31 {approx = true} : vector<8x1xf32> -> vector<8x1xf32>
    %33 = vector.broadcast %32 : vector<8x1xf32> to vector<8x16xf32>
    %34 = arith.mulf %29, %33 : vector<8x16xf32>
    %35 = arith.truncf %34 : vector<8x16xf32> to vector<8x16xbf16>
    %cst_16 = arith.constant dense<0.000000e+00> : vector<8x32xf32>
    %36 = tpu.matmul %35, %21, %cst_16 {dimension_numbers = #tpu.dot_dimension_numbers<[1], [0], [0], [1], [0, 0, 1, 1], [], []>} : vector<8x16xbf16>, vector<16x32xbf16>, vector<8x32xf32> -> vector<8x32xf32>
    %37 = vector.extract_strided_slice %12 {offsets = [0, 32], sizes = [8, 32], strides = [1, 1]} : vector<8x128xf32> to vector<8x32xf32>
    %38 = arith.truncf %37 : vector<8x32xf32> to vector<8x32xbf16>
    %39 = vector.extract_strided_slice %14 {offsets = [0, 32], sizes = [16, 32], strides = [1, 1]} : vector<16x128xf32> to vector<16x32xf32>
    %40 = arith.truncf %39 : vector<16x32xf32> to vector<16x32xbf16>
    %41 = vector.extract_strided_slice %15 {offsets = [0, 32], sizes = [16, 32], strides = [1, 1]} : vector<16x128xf32> to vector<16x32xf32>
    %42 = arith.truncf %41 : vector<16x32xf32> to vector<16x32xbf16>
    %cst_17 = arith.constant dense<0.000000e+00> : vector<8x16xf32>
    %43 = tpu.matmul %38, %40, %cst_17 {dimension_numbers = #tpu.dot_dimension_numbers<[1], [1], [0], [0], [0, 0, 1, 0], [], []>} : vector<8x32xbf16>, vector<16x32xbf16>, vector<8x16xf32> -> vector<8x16xf32>
    %cst_18 = arith.constant 0.176776692 : f32
    %44 = vector.broadcast %cst_18 : f32 to vector<8x16xf32>
    %45 = arith.mulf %43, %44 : vector<8x16xf32>
    %cst_19 = arith.constant dense<0xFF800000> : vector<8xf32>
    %46 = vector.multi_reduction <maximumf>, %45, %cst_19 [1] : vector<8x16xf32> to vector<8xf32>
    %47 = vector.shape_cast %46 : vector<8xf32> to vector<8x1xf32>
    %48 = vector.broadcast %47 : vector<8x1xf32> to vector<8x16xf32>
    %49 = arith.subf %45, %48 : vector<8x16xf32>
    %50 = math.exp %49 : vector<8x16xf32>
    %cst_20 = arith.constant dense<0.000000e+00> : vector<8xf32>
    %51 = vector.multi_reduction <add>, %50, %cst_20 [1] : vector<8x16xf32> to vector<8xf32>
    %52 = vector.shape_cast %51 : vector<8xf32> to vector<8x1xf32>
    %53 = tpu.reciprocal %52 {approx = true} : vector<8x1xf32> -> vector<8x1xf32>
    %54 = vector.broadcast %53 : vector<8x1xf32> to vector<8x16xf32>
    %55 = arith.mulf %50, %54 : vector<8x16xf32>
    %56 = arith.truncf %55 : vector<8x16xf32> to vector<8x16xbf16>
    %cst_21 = arith.constant dense<0.000000e+00> : vector<8x32xf32>
    %57 = tpu.matmul %56, %42, %cst_21 {dimension_numbers = #tpu.dot_dimension_numbers<[1], [0], [0], [1], [0, 0, 1, 1], [], []>} : vector<8x16xbf16>, vector<16x32xbf16>, vector<8x32xf32> -> vector<8x32xf32>
    %58 = vector.extract_strided_slice %12 {offsets = [0, 64], sizes = [8, 32], strides = [1, 1]} : vector<8x128xf32> to vector<8x32xf32>
    %59 = arith.truncf %58 : vector<8x32xf32> to vector<8x32xbf16>
    %60 = vector.extract_strided_slice %14 {offsets = [0, 64], sizes = [16, 32], strides = [1, 1]} : vector<16x128xf32> to vector<16x32xf32>
    %61 = arith.truncf %60 : vector<16x32xf32> to vector<16x32xbf16>
    %62 = vector.extract_strided_slice %15 {offsets = [0, 64], sizes = [16, 32], strides = [1, 1]} : vector<16x128xf32> to vector<16x32xf32>
    %63 = arith.truncf %62 : vector<16x32xf32> to vector<16x32xbf16>
    %cst_22 = arith.constant dense<0.000000e+00> : vector<8x16xf32>
    %64 = tpu.matmul %59, %61, %cst_22 {dimension_numbers = #tpu.dot_dimension_numbers<[1], [1], [0], [0], [0, 0, 1, 0], [], []>} : vector<8x32xbf16>, vector<16x32xbf16>, vector<8x16xf32> -> vector<8x16xf32>
    %cst_23 = arith.constant 0.176776692 : f32
    %65 = vector.broadcast %cst_23 : f32 to vector<8x16xf32>
    %66 = arith.mulf %64, %65 : vector<8x16xf32>
    %cst_24 = arith.constant dense<0xFF800000> : vector<8xf32>
    %67 = vector.multi_reduction <maximumf>, %66, %cst_24 [1] : vector<8x16xf32> to vector<8xf32>
    %68 = vector.shape_cast %67 : vector<8xf32> to vector<8x1xf32>
    %69 = vector.broadcast %68 : vector<8x1xf32> to vector<8x16xf32>
    %70 = arith.subf %66, %69 : vector<8x16xf32>
    %71 = math.exp %70 : vector<8x16xf32>
    %cst_25 = arith.constant dense<0.000000e+00> : vector<8xf32>
    %72 = vector.multi_reduction <add>, %71, %cst_25 [1] : vector<8x16xf32> to vector<8xf32>
    %73 = vector.shape_cast %72 : vector<8xf32> to vector<8x1xf32>
    %74 = tpu.reciprocal %73 {approx = true} : vector<8x1xf32> -> vector<8x1xf32>
    %75 = vector.broadcast %74 : vector<8x1xf32> to vector<8x16xf32>
    %76 = arith.mulf %71, %75 : vector<8x16xf32>
    %77 = arith.truncf %76 : vector<8x16xf32> to vector<8x16xbf16>
    %cst_26 = arith.constant dense<0.000000e+00> : vector<8x32xf32>
    %78 = tpu.matmul %77, %63, %cst_26 {dimension_numbers = #tpu.dot_dimension_numbers<[1], [0], [0], [1], [0, 0, 1, 1], [], []>} : vector<8x16xbf16>, vector<16x32xbf16>, vector<8x32xf32> -> vector<8x32xf32>
    %79 = vector.extract_strided_slice %12 {offsets = [0, 96], sizes = [8, 32], strides = [1, 1]} : vector<8x128xf32> to vector<8x32xf32>
    %80 = arith.truncf %79 : vector<8x32xf32> to vector<8x32xbf16>
    %81 = vector.extract_strided_slice %14 {offsets = [0, 96], sizes = [16, 32], strides = [1, 1]} : vector<16x128xf32> to vector<16x32xf32>
    %82 = arith.truncf %81 : vector<16x32xf32> to vector<16x32xbf16>
    %83 = vector.extract_strided_slice %15 {offsets = [0, 96], sizes = [16, 32], strides = [1, 1]} : vector<16x128xf32> to vector<16x32xf32>
    %84 = arith.truncf %83 : vector<16x32xf32> to vector<16x32xbf16>
    %cst_27 = arith.constant dense<0.000000e+00> : vector<8x16xf32>
    %85 = tpu.matmul %80, %82, %cst_27 {dimension_numbers = #tpu.dot_dimension_numbers<[1], [1], [0], [0], [0, 0, 1, 0], [], []>} : vector<8x32xbf16>, vector<16x32xbf16>, vector<8x16xf32> -> vector<8x16xf32>
    %cst_28 = arith.constant 0.176776692 : f32
    %86 = vector.broadcast %cst_28 : f32 to vector<8x16xf32>
    %87 = arith.mulf %85, %86 : vector<8x16xf32>
    %cst_29 = arith.constant dense<0xFF800000> : vector<8xf32>
    %88 = vector.multi_reduction <maximumf>, %87, %cst_29 [1] : vector<8x16xf32> to vector<8xf32>
    %89 = vector.shape_cast %88 : vector<8xf32> to vector<8x1xf32>
    %90 = vector.broadcast %89 : vector<8x1xf32> to vector<8x16xf32>
    %91 = arith.subf %87, %90 : vector<8x16xf32>
    %92 = math.exp %91 : vector<8x16xf32>
    %cst_30 = arith.constant dense<0.000000e+00> : vector<8xf32>
    %93 = vector.multi_reduction <add>, %92, %cst_30 [1] : vector<8x16xf32> to vector<8xf32>
    %94 = vector.shape_cast %93 : vector<8xf32> to vector<8x1xf32>
    %95 = tpu.reciprocal %94 {approx = true} : vector<8x1xf32> -> vector<8x1xf32>
    %96 = vector.broadcast %95 : vector<8x1xf32> to vector<8x16xf32>
    %97 = arith.mulf %92, %96 : vector<8x16xf32>
    %98 = arith.truncf %97 : vector<8x16xf32> to vector<8x16xbf16>
    %cst_31 = arith.constant dense<0.000000e+00> : vector<8x32xf32>
    %99 = tpu.matmul %98, %84, %cst_31 {dimension_numbers = #tpu.dot_dimension_numbers<[1], [0], [0], [1], [0, 0, 1, 1], [], []>} : vector<8x16xbf16>, vector<16x32xbf16>, vector<8x32xf32> -> vector<8x32xf32>
    %100 = tpu.concatenate %36, %57, %78, %99 in 1 : vector<8x32xf32>, vector<8x32xf32>, vector<8x32xf32>, vector<8x32xf32> -> vector<8x128xf32>
    %101 = arith.truncf %100 : vector<8x128xf32> to vector<8x128xbf16>
    %cst_32 = arith.constant dense<0.000000e+00> : vector<8x8xf32>
    %102 = tpu.matmul %101, %11, %cst_32 {dimension_numbers = #tpu.dot_dimension_numbers<[1], [0], [0], [1], [0, 0, 1, 1], [], []>} : vector<8x128xbf16>, vector<128x8xbf16>, vector<8x8xf32> -> vector<8x8xf32>
    %c0_33 = arith.constant 0 : index
    %c0_34 = arith.constant 0 : index
    %c0_35 = arith.constant 0 : index
    %103 = vector.load %arg7[%c0_33, %c0_34, %c0_35] : memref<1x8x8xf32, #tpu.memory_space<vmem>>, vector<1x8x8xf32>
    %104 = vector.shape_cast %103 : vector<1x8x8xf32> to vector<8x8xf32>
    %105 = vector.shape_cast %102 : vector<8x8xf32> to vector<1x8x8xf32>
    tpu.vector_store %arg7[%c0_33, %c0_34, %c0_35], %105 {strides = array<i32>} : memref<1x8x8xf32, #tpu.memory_space<vmem>>, vector<1x8x8xf32>,
    return
  }
  func.func @transform_0(%arg0: i32, %arg1: i32) -> (i32, i32, i32) {
    %c0_i32 = arith.constant 0 : i32
    %c0_i32_0 = arith.constant 0 : i32
    return %arg0, %arg1, %c0_i32 : i32, i32, i32
  }
  func.func @transform_1(%arg0: i32, %arg1: i32) -> (i32, i32, i32) {
    %c0_i32 = arith.constant 0 : i32
    %c0_i32_0 = arith.constant 0 : i32
    %c0_i32_1 = arith.constant 0 : i32
    return %arg0, %c0_i32, %c0_i32_0 : i32, i32, i32
  }
  func.func @transform_2(%arg0: i32, %arg1: i32) -> (i32, i32) {
    %c0_i32 = arith.constant 0 : i32
    %c0_i32_0 = arith.constant 0 : i32
    %c0_i32_1 = arith.constant 0 : i32
    return %c0_i32, %c0_i32_0 : i32, i32
  }
  func.func @transform_3(%arg0: i32, %arg1: i32) -> (i32, i32) {
    %c0_i32 = arith.constant 0 : i32
    %c0_i32_0 = arith.constant 0 : i32
    %c0_i32_1 = arith.constant 0 : i32
    return %c0_i32, %c0_i32_0 : i32, i32
  }
  func.func @transform_4(%arg0: i32, %arg1: i32) -> (i32, i32) {
    %c0_i32 = arith.constant 0 : i32
    %c0_i32_0 = arith.constant 0 : i32
    %c0_i32_1 = arith.constant 0 : i32
    return %c0_i32, %c0_i32_0 : i32, i32
  }
  func.func @transform_5(%arg0: i32, %arg1: i32) -> (i32, i32, i32) {
    %c0_i32 = arith.constant 0 : i32
    %c0_i32_0 = arith.constant 0 : i32
    return %arg0, %arg1, %c0_i32 : i32, i32, i32
  }
}

</mosaic_0001>

<bundles_post_ra>
// kernel: tpu_custom_call.1
= control target key start
LH: loop header
LB: loop body
LE: loop exit
PB: predicated region body
PF: predicated region fallthrough
CT: control target
= control target key end

     0   :  { %s1270_s18 = smov 0   ;;  %s1272_s19 = smov 0   ;;  %s1477_s0 = inlined_call_operand.vmem [shape: f32[2,16,8], index: 0, kind: input, shape index: {}]   ;;  %s1478_s1 = inlined_call_operand.vmem [shape: f32[2,16,8], index: 1, kind: input, shape index: {}]   ;;  %s1479_s2 = inlined_call_operand.vmem [shape: f32[8,128], index: 2, kind: input, shape index: {}]   ;;  %s1480_s3 = inlined_call_operand.vmem [shape: f32[8,256], index: 3, kind: input, shape index: {}]   ;;  %s1481_s4 = inlined_call_operand.vmem [shape: f32[128,8], index: 4, kind: input, shape index: {}]   ;;  %s1482_s5 = inlined_call_operand.vmem [shape: f32[2,16,8], index: 5, kind: output, shape index: {}]  }
   0x1   :  { %s1274_s20 = smov 0   ;;  %s1276_s21 = smov 0  }
   0x2   :  { %s1278_s22 = smov 0  }
   0x3 LB: > { %s24_s23 = sadd.s32 1, %s1224_s20  ;;  %s27_s24 = sadd.s32 1, %s1228_s21  ;;  %s1232_s22 = sphi %s1278_s22, %s15_s22   ;;  %s1228_s21 = sphi %s1276_s21, %s1486_s21   ;;  %s1224_s20 = sphi %s1274_s20, %s1485_s20   ;;  %s1220_s19 = sphi %s1272_s19, %s1484_s19   ;;  %s1216_s18 = sphi %s1270_s18, %s1483_s18  }
   0x4   : > { %p25_p0 = scmp.ge.s32.totalorder %s24_s23, 2  ;;  %p1010_p1 = scmp.ge.s32.totalorder %s1232_s22, 1 }
   0x5   : > { %p216_p2 = scmp.lt.s32.totalorder %s1232_s22, 5 }
   0x6   : > { %s1488_s23 = smov (%p25_p0, %s24_s23), 0  ;;  %s1490_s24 = smov (!%p25_p0, %s27_s24), %s1228_s21 }
   0x7   : > { %p217_p3 = pnand %p1010_p1, %p216_p2  ;;  %p29_p4 = scmp.ge.s32.totalorder %s1490_s24, 2 }
   0x8   : > { %v285_v0 = vld [vmem:[%s1480_s3 + $0x8] sm:$0xff] (!%p217_p3)  ;;  %vm316_vm0 = vcmask (!%p217_p3), 1043456   ;;  %v284_v1 = vld [vmem:[%s1480_s3] sm:$0xff] (!%p217_p3)  ;;  %p255_p5 = scmp.lt.s32.totalorder (!%p217_p3), %s1220_s19, 1  ;;  %v1234_v4 = vmov (!%p217_p3), 0   ;;  %p257_p6 = scmp.lt.s32.totalorder (!%p217_p3), %s1216_s18, 1 }
   0x9   : > { %s1492_s24 = smov (%p29_p4, %s1490_s24), 0  ;;  %220 = sbr.rel (%p217_p3) target bundleno = 1883 (0x75b), region = 40 }
   0xa   : > { %v287_v2 = vpack.c.bf16 (!%p217_p3), %v285_v0, %v285_v0  ;;  %v286_v3 = vpack.c.bf16 (!%p217_p3), %v284_v1, %v284_v1  ;;  %401 = vmatprep.mubr.bf16.mxu1 (!%p217_p3), %v1234_v4  ;;  %v282_v5 = vld [vmem:[%s1479_s2] sm:$0xff] (!%p217_p3)  ;;  %v1235_v6 = vmov (!%p217_p3), 0.0   ;;  %vm1236_vm1 = vmmov (!%p217_p3), 0   ;;  %s1237_s16 = smov (!%p217_p3), 96   ;;  %s1238_s17 = smov (!%p217_p3), 64  }
   0xb   : > { %1058 = vmatprep.subr.bf16.mxu0 (!%p217_p3), %v1235_v6  ;;  %v283_v7 = vpack.c.bf16 (!%p217_p3), %v282_v5, %v282_v5  ;;  %1060 = vmatprep.mubr.msk.bf16.mxu0 (!%p217_p3), %vm1236_vm1, %v1235_v6  ;;  %vm312_vm2 = vcmask (!%p217_p3), 64512   ;;  %vm415_vm3 = vcmask (!%p217_p3), 261120   ;;  %vm463_vm4 = vcmask (!%p217_p3), 130048  }
   0xc   : > { %1018 = vmatprep.subr.msk.bf16.mxu1 (!%p217_p3), %vm316_vm0, %v287_v2  ;;  %v364_v8 = vsel (!%p217_p3), %vm316_vm0, %v286_v3, 0  ;;  %vm862_vm5 = vcmask (!%p217_p3), 523264   ;;  %vm864_vm6 = vcmask (!%p217_p3), 785408  }
   0xd   : > { %370 = vmatpush1.bf16.msra.mxu1 (!%p217_p3), %v364_v8  ;;  %v318_v9 = vsel (!%p217_p3), %vm316_vm0, %v283_v7, 0 }
   0xe   : > { %1059 = vmatpush3.bf16.msra.mxu0 (!%p217_p3), %v318_v9  ;;  %1064 = vmatprep.subr.bf16.mxu1 (!%p217_p3), %v1235_v6 }
   0xf   : > { %1088 = vmatprep.subr.bf16.mxu0 (!%p217_p3), %v1235_v6 }
  0x10   : > { %s1494_s19 = smov (!%p255_p5, %s1220_s19), 1  ;;  %s1496_s18 = smov (!%p257_p6, %s1216_s18), 1 }
  0x11   : > { %s1030_s6 = sshll.u32 %s1494_s19, 4  ;;  %s1011_s7 = sshll.u32 %s1494_s19, 1 }
  0x12   : > { %s267_s10 = scalar_lea.vmem %s1478_s1, %s1030_s6  ;;  %s1322_s11 = sadd.s32 %s1011_s7, %s1496_s18 }
  0x13   : > { %v279_v10 = vld [vmem:[%s267_s10] sm:$0xff]  ;;  %v280_v11 = vld [vmem:[%s267_s10 + $0x8] sm:$0xff]  ;;  %s1012_s12 = sshll.u32 %s1322_s11, 3  ;;  %s1239_s18 = smov 32  }
  0x14   : > { %v281_v12 = vpack.c.bf16 %v280_v11, %v279_v10  ;;  %s262_s15 = scalar_lea.vmem %s1477_s0, %s1012_s12 }
  0x15   : > { %v277_v13 = vld [vmem:[%s262_s15] sm:$0xff] }
  0x16   : > { %1019 = vmatmul.mubr.msk.bf16.vlgmr.msra.gmra.mrb[0].mxu1 %vm312_vm2, %v281_v12  ;;  %v278_v14 = vpack.c.bf16 %v277_v13, %v277_v13 }
  0x17   : > { %1066 = vmatprep.mubr.msk.bf16.mxu1 %vm1236_vm1, %v1235_v6 }
  0x18   : > { %1061 = vmatmul.mubr.msk.bf16.vlgmr.msra.gmra.mrb[0].mxu0 %vm312_vm2, %v278_v14 }
  0x19   : > { %1090 = vmatprep.mubr.msk.bf16.mxu0 %vm1236_vm1, %v1235_v6 }
  0xe9   : > { %v403_v15 = vpop.f32.mrb[0].mxu1 }
  0xea   : > { %v405_v16 = vpop.f32.mrb[1].mxu1 }
  0xeb   : > { %v407_v17 = vpop.f32.mrb[2].mxu1  ;;  %v354_v18 = vpop.f32.mrb[0].mxu0 }
  0xec   : > { %v413_v19 = vpack.c.bf16 %v407_v17, %v403_v15  ;;  %v409_v20 = vpop.f32.mrb[3].mxu1  ;;  %v1062_v21 = vpop.f32.mrb[1].mxu0  ;;  %v412_v24 = vpack.c.bf16 %v354_v18, %v354_v18 }
  0xed   : > { %v1338_v22 = vpack.c.bf16 %v409_v20, %v405_v16  ;;  %v357_v23 = vpop.f32.mrb[2].mxu0 }
  0xee   : > { %523 = vrot.lane.b32.xlu1 %v413_v19, %s1237_s16  ;;  %v420_v25 = vsel %vm415_vm3, %v413_v19, 0  ;;  %v1063_v26 = vpop.f32.mrb[3].mxu0 }
  0xef   : > { %1065 = vmatpush3.bf16.xpose.msra.mxu1 %v420_v25 }
  0xf0   : > { %1070 = vmatprep.subr.bf16.mxu1 %v1235_v6 }
  0xf2   : > { %520 = vrot.lane.b32.xlu1 %v412_v24, %s1237_s16 }
  0xf6   : > { %631 = vrot.lane.b32.xlu1 %v412_v24, %s1238_s17  ;;  %1067 = vmatmul.mubr.msk.bf16.vlgmr.msra.gmra.mrb[4].mxu1 %vm415_vm3, %v412_v24 }
  0xf7   : > { %1071 = vmatpush3.bf16.msra.mxu1 %v1338_v22  ;;  %1072 = vmatprep.mubr.msk.bf16.mxu1 %vm1236_vm1, %v1235_v6 }
  0xf8   : > { %1076 = vmatprep.subr.bf16.mxu1 %v1235_v6 }
  0xfa   : > { %742 = vrot.lane.b32.xlu1 %v413_v19, %s1239_s18 }
  0xfe   : > { %740 = vrot.lane.b32.xlu1 %v412_v24, %s1239_s18 }
 0x160   : > { %v524_v38 = vpop.permute.xlu1 %523 }
 0x161   : > { %v529_v49 = vsel %vm415_vm3, %v524_v38, 0 }
 0x164   : > { %v521_v39 = vpop.permute.xlu1 %520 }
 0x168   : > { %v632_v41 = vpop.permute.xlu1 %631 }
 0x16c   : > { %v743_v44 = vpop.permute.xlu1 %742 }
 0x16d   : > { %v748_v47 = vsel %vm415_vm3, %v743_v44, 0  ;;  %v291_v44 = vld [vmem:[%s1481_s4 + $0x18] sm:$0xff] }
 0x170   : > { %v741_v50 = vpop.permute.xlu1 %740 }
 0x1c9   : > { %v456_v27 = vpop.f32.mrb[4].mxu1 }
 0x1ca   : > { %v462_v28 = vmul.f32 0.17677669, %v456_v27  ;;  %v1068_v29 = vpop.f32.mrb[5].mxu1 }
 0x1cb   : > { %v459_v30 = vpop.f32.mrb[6].mxu1 }
 0x1cc   : > { %v1069_v31 = vpop.f32.mrb[7].mxu1  ;;  %v464_v32 = vsel %vm463_vm4, %v462_v28, -inf }
 0x1cd   : > { %465 = vmax.xlane.f32.xlu0 %v464_v32 }
 0x25a   : > { %v466_v33 = vpop.xlane.xlu0 %465 }
 0x25b   : > { %v467_v34 = vsub.f32 %v462_v28, %v466_v33 }
 0x25d   : > { %v468_v35 = vmul.f32 1.442695, %v467_v34 }
 0x25f   : > { %1178 = vpow2.f32 %v468_v35 }
 0x269   : > { %v1179_v36 = vpop.eup %1178 }
 0x26a   : > { %v470_v37 = vsel %vm463_vm4, %v1179_v36, 0.0 }
 0x26b   : > { %471 = vadd.xlane.f32.xlu0 %v470_v37 }
 0x281   : > { %633 = vrot.lane.b32.xlu0 %v413_v19, %s1238_s17 }
 0x2f8   : > { %v472_v40 = vpop.xlane.xlu0 %471 }
 0x2f9   : > { %1180 = vrcp.f32 %v472_v40  ;;  %v288_v40 = vld [vmem:[%s1481_s4] sm:$0xff] }
 0x2fc   : > { %v634_v42 = vpop.permute.xlu0 %633 }
 0x2fd   : > { %v639_v43 = vsel %vm415_vm3, %v634_v42, 0  ;;  %v290_v42 = vld [vmem:[%s1481_s4 + $0x10] sm:$0xff] }
 0x2fe   : > { %1089 = vmatpush3.bf16.xpose.msra.mxu0 %v639_v43 }
 0x2ff   : > { %1100 = vmatprep.subr.bf16.mxu0 %v1235_v6 }
 0x303   : > { %v1181_v45 = vpop.eup %1180 }
 0x304   : > { %v474_v46 = vmul.f32 %v1181_v45, %v1179_v36  ;;  %v305_v45 = vpack.c.bf16 %v291_v44, %v290_v42 }
 0x305   : > { %1091 = vmatmul.mubr.msk.bf16.vlgmr.msra.gmra.mrb[4].mxu0 %vm415_vm3, %v632_v41  ;;  %v289_v41 = vld [vmem:[%s1481_s4 + $0x8] sm:$0xff] }
 0x306   : > { %1101 = vmatpush3.bf16.xpose.msra.mxu0 %v748_v47  ;;  %v475_v48 = vpack.c.bf16 %v474_v46, %v474_v46  ;;  %1102 = vmatprep.mubr.msk.bf16.mxu0 %vm1236_vm1, %v1235_v6  ;;  %v304_v43 = vpack.c.bf16 %v289_v41, %v288_v40  ;;  %v292_v46 = vld [vmem:[%s1481_s4 + $0x20] sm:$0xff]  ;;  %v293_v47 = vld [vmem:[%s1481_s4 + $0x28] sm:$0xff] }
 0x307   : > { %1112 = vmatprep.subr.bf16.mxu0 %v1235_v6 }
 0x308   : > { %1073 = vmatmul.mubr.msk.bf16.vlgmr.msra.gmra.mrb[8].mxu1 %vm463_vm4, %v475_v48  ;;  %v306_v48 = vpack.c.bf16 %v293_v47, %v292_v46 }
 0x309   : > { %1077 = vmatpush3.bf16.xpose.msra.mxu1 %v529_v49  ;;  %1078 = vmatprep.mubr.msk.bf16.mxu1 %vm1236_vm1, %v1235_v6  ;;  %v294_v49 = vld [vmem:[%s1481_s4 + $0x30] sm:$0xff] }
 0x30a   : > { %1082 = vmatprep.subr.bf16.mxu1 %v1235_v6 }
 0x30d   : > { %1103 = vmatmul.mubr.msk.bf16.vlgmr.msra.gmra.mrb[8].mxu0 %vm415_vm3, %v741_v50  ;;  %v295_v50 = vld [vmem:[%s1481_s4 + $0x38] sm:$0xff] }
 0x30e   : > { %1128 = vmatprep.mubr.msk.bf16.mxu0 %vm1236_vm1, %v1235_v6  ;;  %1113 = vmatpush3.bf16.msra.mxu0 %v304_v43 }
 0x30f   : > { %1114 = vmatprep.subr.bf16.mxu0 %v1235_v6 }
 0x310   : > { %1079 = vmatmul.mubr.msk.bf16.vlgmr.msra.gmra.mrb[12].mxu1 %vm415_vm3, %v521_v39 }
 0x311   : > { %1084 = vmatprep.mubr.msk.bf16.mxu1 %vm1236_vm1, %v1235_v6 }
 0x312   : > { %1115 = vmatpush3.bf16.msra.mxu0 %v305_v45 }
 0x313   : > { %1116 = vmatprep.subr.bf16.mxu0 %v1235_v6 }
 0x316   : > { %1117 = vmatpush3.bf16.msra.mxu0 %v306_v48 }
 0x317   : > { %1118 = vmatprep.subr.bf16.mxu0 %v1235_v6 }
 0x3d8   : > { %v675_v51 = vpop.f32.mrb[4].mxu0 }
 0x3d9   : > { %v681_v52 = vmul.f32 0.17677669, %v675_v51  ;;  %v1092_v53 = vpop.f32.mrb[5].mxu0  ;;  %v307_v51 = vpack.c.bf16 %v295_v50, %v294_v49 }
 0x3da   : > { %v678_v54 = vpop.f32.mrb[6].mxu0  ;;  %v297_v53 = vld [vmem:[%s1481_s4 + $0x48] sm:$0xff] }
 0x3db   : > { %v1373_v55 = vpop.f32.mrb[8].mxu1  ;;  %v1093_v56 = vpop.f32.mrb[7].mxu0  ;;  %v682_v57 = vsel %vm463_vm4, %v681_v52, -inf  ;;  %1119 = vmatpush3.bf16.msra.mxu0 %v307_v51 }
 0x3dc   : > { %v1074_v58 = vpop.f32.mrb[9].mxu1  ;;  %683 = vmax.xlane.f32.xlu0 %v682_v57  ;;  %1120 = vmatprep.subr.bf16.mxu0 %v1235_v6  ;;  %v298_v56 = vld [vmem:[%s1481_s4 + $0x50] sm:$0xff]  ;;  %v299_v57 = vld [vmem:[%s1481_s4 + $0x58] sm:$0xff] }
 0x3dd   : > { %v516_v59 = vpop.f32.mrb[10].mxu1  ;;  %v309_v58 = vpack.c.bf16 %v299_v57, %v298_v56 }
 0x3de   : > { %v1075_v60 = vpop.f32.mrb[11].mxu1  ;;  %v300_v59 = vld [vmem:[%s1481_s4 + $0x60] sm:$0xff] }
 0x3df   : > { %v301_v60 = vld [vmem:[%s1481_s4 + $0x68] sm:$0xff] }
 0x3e0   : > { %v784_v61 = vpop.f32.mrb[8].mxu0 }
 0x3e1   : > { %v1104_v62 = vpop.f32.mrb[9].mxu0  ;;  %v790_v5 = vmul.f32 0.17677669, %v784_v61  ;;  %v310_v61 = vpack.c.bf16 %v301_v60, %v300_v59 }
 0x3e2   : > { %v787_v63 = vpop.f32.mrb[10].mxu0 }
 0x3e3   : > { %v565_v0 = vpop.f32.mrb[12].mxu1  ;;  %v1105_v1 = vpop.f32.mrb[11].mxu0  ;;  %v791_v9 = vsel %vm463_vm4, %v790_v5, -inf }
 0x3e4   : > { %v571_v2 = vmul.f32 0.17677669, %v565_v0  ;;  %v1080_v3 = vpop.f32.mrb[13].mxu1  ;;  %v302_v1 = vld [vmem:[%s1481_s4 + $0x70] sm:$0xff] }
 0x3e5   : > { %v568_v4 = vpop.f32.mrb[14].mxu1 }
 0x3e6   : > { %v1081_v7 = vpop.f32.mrb[15].mxu1  ;;  %v572_v8 = vsel %vm463_vm4, %v571_v2, -inf }
 0x3e7   : > { %573 = vmax.xlane.f32.xlu1 %v572_v8 }
 0x3eb   : > { %792 = vmax.xlane.f32.xlu1 %v791_v9 }
 0x469   : > { %v684_v10 = vpop.xlane.xlu0 %683 }
 0x46a   : > { %v685_v11 = vsub.f32 %v681_v52, %v684_v10  ;;  %v296_v52 = vld [vmem:[%s1481_s4 + $0x40] sm:$0xff] }
 0x46b   : > { %v308_v54 = vpack.c.bf16 %v297_v53, %v296_v52 }
 0x46c   : > { %v686_v12 = vmul.f32 1.442695, %v685_v11 }
 0x46d   : > { %1121 = vmatpush3.bf16.msra.mxu0 %v308_v54 }
 0x46e   : > { %1182 = vpow2.f32 %v686_v12  ;;  %1122 = vmatprep.subr.bf16.mxu0 %v1235_v6 }
 0x471   : > { %1123 = vmatpush3.bf16.msra.mxu0 %v309_v58 }
 0x472   : > { %1124 = vmatprep.subr.bf16.mxu0 %v1235_v6 }
 0x474   : > { %v574_v13 = vpop.xlane.xlu1 %573 }
 0x475   : > { %v575_v14 = vsub.f32 %v571_v2, %v574_v13  ;;  %1125 = vmatpush3.bf16.msra.mxu0 %v310_v61  ;;  %v303_v2 = vld [vmem:[%s1481_s4 + $0x78] sm:$0xff] }
 0x476   : > { %1126 = vmatprep.subr.bf16.mxu0 %v1235_v6  ;;  %v311_v4 = vpack.c.bf16 %v303_v2, %v302_v1 }
 0x477   : > { %v576_v19 = vmul.f32 1.442695, %v575_v14 }
 0x478   : > { %v1183_v15 = vpop.eup %1182  ;;  %v793_v16 = vpop.xlane.xlu1 %792 }
 0x479   : > { %v794_v17 = vsub.f32 %v790_v5, %v793_v16  ;;  %v688_v18 = vsel %vm463_vm4, %v1183_v15, 0.0  ;;  %1127 = vmatpush3.bf16.msra.mxu0 %v311_v4 }
 0x47a   : > { %689 = vadd.xlane.f32.xlu0 %v688_v18 }
 0x47b   : > { %v795_v20 = vmul.f32 1.442695, %v794_v17 }
 0x47d   : > { %1184 = vpow2.f32 %v795_v20 }
 0x47e   : > { %1186 = vpow2.f32 %v576_v19 }
 0x487   : > { %v1185_v21 = vpop.eup %1184 }
 0x488   : > { %v797_v23 = vsel %vm463_vm4, %v1185_v21, 0.0  ;;  %v1187_v24 = vpop.eup %1186 }
 0x489   : > { %798 = vadd.xlane.f32.xlu1 %v797_v23  ;;  %v578_v25 = vsel %vm463_vm4, %v1187_v24, 0.0 }
 0x48d   : > { %579 = vadd.xlane.f32.xlu1 %v578_v25 }
 0x490   : > { %585 = vrot.lane.b32.xlu0 %v1338_v22, %s1237_s16 }
 0x49e   : > { %694 = vrot.lane.b32.xlu1 %v1338_v22, %s1238_s17 }
 0x4a2   : > { %803 = vrot.lane.b32.xlu1 %v1338_v22, %s1239_s18 }
 0x507   : > { %v690_v26 = vpop.xlane.xlu0 %689 }
 0x50b   : > { %v586_v27 = vpop.permute.xlu0 %585 }
 0x50c   : > { %1083 = vmatpush3.bf16.msra.mxu1 %v586_v27 }
 0x50d   : > { %1094 = vmatprep.subr.bf16.mxu1 %v1235_v6 }
 0x516   : > { %v799_v28 = vpop.xlane.xlu1 %798 }
 0x51a   : > { %v580_v29 = vpop.xlane.xlu1 %579 }
 0x51b   : > { %1188 = vrcp.f32 %v580_v29 }
 0x51c   : > { %1190 = vrcp.f32 %v690_v26 }
 0x51d   : > { %1192 = vrcp.f32 %v799_v28 }
 0x51e   : > { %v695_v34 = vpop.permute.xlu1 %694 }
 0x522   : > { %v804_v37 = vpop.permute.xlu1 %803 }
 0x525   : > { %v1189_v30 = vpop.eup %1188 }
 0x526   : > { %v582_v31 = vmul.f32 %v1189_v30, %v1187_v24  ;;  %v1191_v33 = vpop.eup %1190 }
 0x527   : > { %v692_v22 = vmul.f32 %v1191_v33, %v1183_v15  ;;  %v1193_v36 = vpop.eup %1192 }
 0x528   : > { %v583_v32 = vpack.c.bf16 %v582_v31, %v582_v31  ;;  %v801_v38 = vmul.f32 %v1193_v36, %v1185_v21 }
 0x529   : > { %v693_v35 = vpack.c.bf16 %v692_v22, %v692_v22 }
 0x52a   : > { %1085 = vmatmul.mubr.msk.bf16.vlgmr.msra.gmra.mrb[16].mxu1 %vm463_vm4, %v583_v32  ;;  %v802_v39 = vpack.c.bf16 %v801_v38, %v801_v38 }
 0x52b   : > { %1095 = vmatpush3.bf16.msra.mxu1 %v695_v34  ;;  %1096 = vmatprep.mubr.msk.bf16.mxu1 %vm1236_vm1, %v1235_v6 }
 0x52c   : > { %1106 = vmatprep.subr.bf16.mxu1 %v1235_v6 }
 0x532   : > { %1097 = vmatmul.mubr.msk.bf16.vlgmr.msra.gmra.mrb[20].mxu1 %vm463_vm4, %v693_v35 }
 0x533   : > { %1107 = vmatpush3.bf16.msra.mxu1 %v804_v37  ;;  %1108 = vmatprep.mubr.msk.bf16.mxu1 %vm1236_vm1, %v1235_v6 }
 0x53a   : > { %1109 = vmatmul.mubr.msk.bf16.vlgmr.msra.gmra.mrb[24].mxu1 %vm463_vm4, %v802_v39 }
 0x5fd   : > { %v625_v62 = vpop.f32.mrb[16].mxu1 }
 0x5fe   : > { %850 = vrot.lane.b32.xlu0 %v625_v62, %s1239_s18  ;;  %v1086_v63 = vpop.f32.mrb[17].mxu1 }
 0x5ff   : > { %v628_v0 = vpop.f32.mrb[18].mxu1 }
 0x600   : > { %v1087_v3 = vpop.f32.mrb[19].mxu1 }
 0x605   : > { %v734_v5 = vpop.f32.mrb[20].mxu1 }
 0x606   : > { %854 = vrot.lane.b32.xlu1 %v734_v5, %s1238_s17  ;;  %v1098_v7 = vpop.f32.mrb[21].mxu1 }
 0x607   : > { %v737_v8 = vpop.f32.mrb[22].mxu1 }
 0x608   : > { %v1099_v9 = vpop.f32.mrb[23].mxu1 }
 0x60d   : > { %v843_v10 = vpop.f32.mrb[24].mxu1 }
 0x60e   : > { %858 = vrot.lane.b32.xlu0 %v843_v10, %s1237_s16  ;;  %v1110_v6 = vpop.f32.mrb[25].mxu1  ;;  %s275_s16 = scalar_lea.vmem %s1482_s5, %s1012_s12 }
 0x60f   : > { %v846_v11 = vpop.f32.mrb[26].mxu1 }
 0x610   : > { %v1111_v12 = vpop.f32.mrb[27].mxu1 }
 0x670   : > { %v851_v13 = vpop.permute.xlu0 %850 }
 0x671   : > { %v861_v15 = vsel %vm415_vm3, %v1373_v55, %v851_v13 }
 0x678   : > { %v855_v14 = vpop.permute.xlu1 %854 }
 0x679   : > { %v863_v16 = vsel %vm862_vm5, %v861_v15, %v855_v14 }
 0x680   : > { %v859_v17 = vpop.permute.xlu0 %858 }
 0x681   : > { %v865_v18 = vsel %vm864_vm6, %v863_v16, %v859_v17 }
 0x682   : > { %v866_v19 = vpack.c.bf16 %v865_v18, %v865_v18 }
 0x684   : > { %1129 = vmatmul.mubr.bf16.vlgmr.msra.gmra.mrb[12].mxu0 %v866_v19 }
 0x757   : > { %v901_v20 = vpop.f32.mrb[12].mxu0 }
 0x758   : > { %907 = vst.msk [vmem:[%s275_s16] sm:$0xff] %vm312_vm2, %v901_v20  ;;  %v1130_v21 = vpop.f32.mrb[13].mxu0 }
 0x759   : > { %v904_v23 = vpop.f32.mrb[14].mxu0 }
 0x75a   : > { %v1131_v24 = vpop.f32.mrb[15].mxu0 }
 0x75b PF: > { %s15_s22 = sadd.s32 1, %s1232_s22   ;;  %s1483_s18 = smov %s1224_s20 }
 0x75c   : > { %p12_p7 = scmp.ge.s32.totalorder %s15_s22, 6   ;;  %s1484_s19 = smov %s1228_s21 }
 0x75d   : > { %s1485_s20 = smov %s1488_s23  ;;  %s1486_s21 = smov %s1492_s24 }
 0x75e   :  { %14 = sbr.rel (!%p12_p7) target bundleno = 3 (0x3), region = 73 }

</bundles_post_ra>
